<compile_context>
chip_gen: v5e
topology: v5e:2x2
jax: 0.10.0
libtpu: 0.0.40
codegen_flags: <defaults>
</compile_context>

<pallas_src>
import jax
import jax.numpy as jnp
from jax.experimental import pallas as pl
from jax.experimental.pallas import tpu as pltpu


# --------------------------------------------------------------------------- #
# Pallas kernel
# --------------------------------------------------------------------------- #
def _gcn_kernel(blk_ref, cnt_ref, adj_ref, x_ref, w_ref, b_ref, rs_ref,
                out_ref, acc_ref):
    """Grid (i, k): i = node-row tile, k = position in that row's block list.

    blk_ref: [NRT, NKT] i32 SMEM  occupied column-tile ids (padded, clamped)
    cnt_ref: [NRT]      i32 SMEM  number of occupied column tiles per row tile
    adj_ref: [TM, TK]   int8      exact (A + I) edge counts, tile (i, blk[i,k])
    x_ref:   [TK, Cin]  bf16      D^{-1/2}-scaled feature rows for that tile
    w_ref:   [Cin, Cout] f32      W^T (resident)
    b_ref:   [1, Cout]  f32       bias (resident)
    rs_ref:  [TM, 1]    f32       row-side D^{-1/2} for this row tile
    out_ref: [TM, Cout] f32
    acc_ref: [TM, Cin]  f32       running (A+I) @ (D^{-1/2} X) accumulator
    """
    i = pl.program_id(0)
    k = pl.program_id(1)

    @pl.when(k == 0)
    def _():
        acc_ref[...] = jnp.zeros_like(acc_ref)

    # Skip all-zero adjacency tiles (block-sparse schedule from scalar prefetch).
    @pl.when(k < cnt_ref[i])
    def _():
        a = adj_ref[...].astype(jnp.bfloat16)          # small ints: exact in bf16
        acc_ref[...] += jnp.dot(a, x_ref[...],
                                preferred_element_type=jnp.float32)

    @pl.when(k == pl.num_programs(1) - 1)
    def _():
        ax = acc_ref[...] * rs_ref[...]                # row-side D^{-1/2}, f32
        y = jnp.dot(ax, w_ref[...], preferred_element_type=jnp.float32)  # f32 proj
        y = y + b_ref[...]
        out_ref[...] = jnp.maximum(y, 0.0).astype(out_ref.dtype)


# --------------------------------------------------------------------------- #
# Tiling / VMEM budgeting helpers
# --------------------------------------------------------------------------- #
def _round_up(x, m):
    return (x + m - 1) // m * m


def _vmem_estimate(tm, tk, cin_pad, cout_pad):
    """Double-buffered working set (bytes) for the pipeline."""
    adj = 2 * tm * tk * 1                 # int8
    x = 2 * tk * cin_pad * 2              # bf16
    w = 2 * cin_pad * cout_pad * 4        # f32 (resident)
    bias = 2 * cout_pad * 4
    rs = 2 * tm * 4
    out = 2 * tm * cout_pad * 4
    acc = tm * cin_pad * 4
    return adj + x + w + bias + rs + out + acc


def _pick_tiles(n_pad, cin_pad, cout_pad, budget=40 << 20):
    """Largest tiles that divide n_pad and fit a v7x-safe (~40 MiB) budget."""
    for tm in (512, 256, 128):
        if n_pad % tm:
            continue
        for tk in (1024, 512, 256, 128):
            if n_pad % tk:
                continue
            if _vmem_estimate(tm, tk, cin_pad, cout_pad) <= budget:
                return tm, tk
    return 128, 128


# --------------------------------------------------------------------------- #
# Forward wrapper (glue + pallas_call)
# --------------------------------------------------------------------------- #
def gcn1layer_forward(node_feature, edge_index, w, b):
    """node_feature: [N, Cin] f32; edge_index: [2, E] int32; w: [Cout, Cin]; b: [Cout]."""
    n, cin = node_feature.shape
    cout = w.shape[0]

    n_pad = _round_up(n, 128)
    cin_pad = _round_up(cin, 128)
    cout_pad = _round_up(cout, 128)
    tm, tk = _pick_tiles(n_pad, cin_pad, cout_pad)
    nrt, nkt = n_pad // tm, n_pad // tk

    # ---- glue: exact integer (A + I) counts scattered directly into the padded
    #      int8 kernel operand (no extra N^2 f32 pass); degree for normalization.
    # TODO(synk): the sparse edge_index scatter itself stays as JAX glue.
    src = edge_index[0]
    dst = edge_index[1]
    loop = jnp.arange(n, dtype=edge_index.dtype)
    src = jnp.concatenate([src, loop])
    dst = jnp.concatenate([dst, loop])
    counts = jnp.zeros((n_pad, n_pad), jnp.int8).at[dst, src].add(
        jnp.ones(src.shape, jnp.int8))
    deg = jnp.zeros((n,), jnp.float32).at[dst].add(1.0)
    dis = jnp.where(deg > 0.0, jax.lax.rsqrt(deg), 0.0)        # D^{-1/2}

    # Column-side D^{-1/2} folded into X (bf16); row side applied in-kernel (f32).
    x_p = jnp.zeros((n_pad, cin_pad), jnp.bfloat16).at[:n, :cin].set(
        (node_feature * dis[:, None]).astype(jnp.bfloat16))
    rs_p = jnp.zeros((n_pad, 1), jnp.float32).at[:n, 0].set(dis)
    wt_p = jnp.zeros((cin_pad, cout_pad), jnp.float32).at[:cin, :cout].set(
        jnp.transpose(w).astype(jnp.float32))
    b_p = jnp.zeros((1, cout_pad), jnp.float32).at[0, :cout].set(
        b.astype(jnp.float32))

    # ---- block-sparse schedule (scalar prefetch): for each row tile, the list
    #      of occupied column tiles; padded entries repeat the last valid index
    #      so the pipeline re-uses the already-resident block (no extra DMA).
    occ = jnp.any(counts.reshape(nrt, tm, nkt, tk) != 0, axis=(1, 3))   # [NRT,NKT]
    blk_count = occ.sum(axis=1).astype(jnp.int32)                       # [NRT]
    order = jnp.argsort(jnp.logical_not(occ), axis=1).astype(jnp.int32) # occupied first
    pos = jnp.arange(nkt, dtype=jnp.int32)[None, :]
    clamp = jnp.minimum(pos, jnp.maximum(blk_count[:, None] - 1, 0))
    blk_ids = jnp.take_along_axis(order, clamp, axis=1)                 # [NRT,NKT]

    vmem_need = _vmem_estimate(tm, tk, cin_pad, cout_pad)
    flops = 2 * n_pad * n_pad * cin_pad + 2 * n_pad * cin_pad * cout_pad
    bytes_accessed = (n_pad * n_pad                      # int8 adjacency counts
                      + 2 * n_pad * cin_pad              # bf16 X
                      + 4 * cin_pad * cout_pad           # f32 W^T
                      + 4 * n_pad * cout_pad             # f32 output
                      + 4 * n_pad)                       # row scale

    out_padded = pl.pallas_call(
        _gcn_kernel,
        out_shape=jax.ShapeDtypeStruct((n_pad, cout_pad), jnp.float32),
        grid_spec=pltpu.PrefetchScalarGridSpec(
            num_scalar_prefetch=2,
            grid=(nrt, nkt),
            in_specs=[
                pl.BlockSpec((tm, tk),
                             lambda i, k, blk, cnt: (i, blk[i, k])),       # A+I counts
                pl.BlockSpec((tk, cin_pad),
                             lambda i, k, blk, cnt: (blk[i, k], 0)),       # scaled X
                pl.BlockSpec((cin_pad, cout_pad),
                             lambda i, k, blk, cnt: (0, 0)),               # W^T
                pl.BlockSpec((1, cout_pad),
                             lambda i, k, blk, cnt: (0, 0)),               # bias
                pl.BlockSpec((tm, 1),
                             lambda i, k, blk, cnt: (i, 0)),               # row D^{-1/2}
            ],
            out_specs=pl.BlockSpec((tm, cout_pad),
                                   lambda i, k, blk, cnt: (i, 0)),
            scratch_shapes=[pltpu.VMEM((tm, cin_pad), jnp.float32)],
        ),
        compiler_params=pltpu.CompilerParams(
            dimension_semantics=("parallel", "arbitrary"),
            vmem_limit_bytes=int(min(max(2 * vmem_need, 32 << 20), 48 << 20)),
        ),
        cost_estimate=pl.CostEstimate(flops=flops, transcendentals=0,
                                      bytes_accessed=bytes_accessed),
    )(blk_ids, blk_count, counts, x_p, wt_p, b_p, rs_p)

    return out_padded[:n, :cout]


# --------------------------------------------------------------------------- #
# Reference + params (matches PyG GCNConv defaults)
# --------------------------------------------------------------------------- #
def init_params(key, in_channels, out_channels):
    """Glorot-uniform weight, zero bias (PyG GCNConv default)."""
    lim = jnp.sqrt(6.0 / (in_channels + out_channels))
    w = jax.random.uniform(key, (out_channels, in_channels), jnp.float32, -lim, lim)
    b = jnp.zeros((out_channels,), jnp.float32)
    return w, b


def gcn_reference(node_feature, edge_index, w, b):
    n = node_feature.shape[0]
    src = edge_index[0]
    dst = edge_index[1]
    loop = jnp.arange(n, dtype=edge_index.dtype)
    src = jnp.concatenate([src, loop])
    dst = jnp.concatenate([dst, loop])
    deg = jnp.zeros((n,), jnp.float32).at[dst].add(1.0)
    dis = jnp.where(deg > 0.0, 1.0 / jnp.sqrt(deg), 0.0)
    norm = dis[src] * dis[dst]
    adj = jnp.zeros((n, n), jnp.float32).at[dst, src].add(norm)
    return jnp.maximum(adj @ (node_feature @ w.T) + b, 0.0)


# --------------------------------------------------------------------------- #
if __name__ == "__main__":
    key = jax.random.PRNGKey(0)
    k_feat, k_edge, k_param = jax.random.split(key, 3)

    num_nodes = 16
    in_channels, out_channels = 8, 16
    num_edges = 32

    node_feature = jax.random.normal(k_feat, (num_nodes, in_channels), jnp.float32)
    edge_index = jax.random.randint(k_edge, (2, num_edges), 0, num_nodes, jnp.int32)
    w, b = init_params(k_param, in_channels, out_channels)

    out = gcn1layer_forward(node_feature, edge_index, w, b)
    out = jax.block_until_ready(out)

    ref = gcn_reference(node_feature, edge_index, w, b)
    assert out.shape == (num_nodes, out_channels)
    # Only X is bf16-quantized (adjacency counts are exact, both matmuls accumulate
    # / project in f32) -> tolerance is comfortably met.
    assert jnp.allclose(out, ref, atol=5e-2, rtol=5e-2), "mismatch vs reference"

    print("KERNEL_OK")
</pallas_src>

<mosaic_0001>
module attributes {stable_mosaic.version = 11 : i64} {
  func.func @_gcn_kernel(%arg0: i32, %arg1: i32, %arg2: memref<1x1xi32, #tpu.memory_space<smem>>, %arg3: memref<1xi32, #tpu.memory_space<smem>>, %arg4: memref<128x128xi8, #tpu.memory_space<vmem>>, %arg5: memref<128x128xbf16, #tpu.memory_space<vmem>>, %arg6: memref<128x128xf32, #tpu.memory_space<vmem>>, %arg7: memref<1x128xf32, #tpu.memory_space<vmem>>, %arg8: memref<128x1xf32, #tpu.memory_space<vmem>>, %arg9: memref<128x128xf32, #tpu.memory_space<vmem>>, %arg10: memref<128x128xf32, #tpu.memory_space<vmem>>) attributes {dimension_semantics = [#tpu.dimension_semantics<parallel>, #tpu.dimension_semantics<arbitrary>], iteration_bounds = array<i64: 1, 1>, scalar_prefetch = 2 : i64, scratch_operands = 1 : i64, tpu.core_type = #tpu.core_type<tc>, window_params = [{transform_indices = @transform_0, window_bounds = array<i64: 128, 128>}, {transform_indices = @transform_1, window_bounds = array<i64: 128, 128>}, {pipeline_mode = #tpu.pipeline_mode<synchronous>, transform_indices = @transform_2, window_bounds = array<i64: 128, 128>}, {pipeline_mode = #tpu.pipeline_mode<synchronous>, transform_indices = @transform_3, window_bounds = array<i64: 1, 128>}, {transform_indices = @transform_4, window_bounds = array<i64: 128, 1>}, {transform_indices = @transform_5, window_bounds = array<i64: 128, 128>}]} {
    %c0_i32 = arith.constant 0 : i32
    %0 = arith.cmpi eq, %arg1, %c0_i32 : i32
    %1 = arith.extui %0 : i1 to i32
    %c0_i32_0 = arith.constant 0 : i32
    %2 = arith.cmpi ne, %1, %c0_i32_0 : i32
    scf.if %2 {
      %cst = arith.constant 0.000000e+00 : f32
      %11 = vector.broadcast %cst : f32 to vector<128x128xf32>
      %c0 = arith.constant 0 : index
      %c0_4 = arith.constant 0 : index
      %12 = vector.load %arg10[%c0, %c0_4] : memref<128x128xf32, #tpu.memory_space<vmem>>, vector<128x128xf32>
      tpu.vector_store %arg10[%c0, %c0_4], %11 {strides = array<i32>} : memref<128x128xf32, #tpu.memory_space<vmem>>, vector<128x128xf32>,
    } else {
    }
    %3 = arith.index_cast %arg0 : i32 to index
    %4 = memref.load %arg3[%3] : memref<1xi32, #tpu.memory_space<smem>>
    %5 = arith.cmpi slt, %arg1, %4 : i32
    %6 = arith.extui %5 : i1 to i32
    %c0_i32_1 = arith.constant 0 : i32
    %7 = arith.cmpi ne, %6, %c0_i32_1 : i32
    scf.if %7 {
      %c0 = arith.constant 0 : index
      %c0_4 = arith.constant 0 : index
      %11 = vector.load %arg4[%c0, %c0_4] : memref<128x128xi8, #tpu.memory_space<vmem>>, vector<128x128xi8>
      %12 = arith.sitofp %11 : vector<128x128xi8> to vector<128x128xbf16>
      %c0_5 = arith.constant 0 : index
      %c0_6 = arith.constant 0 : index
      %13 = vector.load %arg10[%c0_5, %c0_6] : memref<128x128xf32, #tpu.memory_space<vmem>>, vector<128x128xf32>
      %c0_7 = arith.constant 0 : index
      %c0_8 = arith.constant 0 : index
      %14 = vector.load %arg5[%c0_7, %c0_8] : memref<128x128xbf16, #tpu.memory_space<vmem>>, vector<128x128xbf16>
      %cst = arith.constant dense<0.000000e+00> : vector<128x128xf32>
      %15 = tpu.matmul %12, %14, %cst {dimension_numbers = #tpu.dot_dimension_numbers<[1], [0], [0], [1], [0, 0, 1, 1], [], []>} : vector<128x128xbf16>, vector<128x128xbf16>, vector<128x128xf32> -> vector<128x128xf32>
      %16 = arith.addf %13, %15 : vector<128x128xf32>
      %c0_9 = arith.constant 0 : index
      %c0_10 = arith.constant 0 : index
      %17 = vector.load %arg10[%c0_9, %c0_10] : memref<128x128xf32, #tpu.memory_space<vmem>>, vector<128x128xf32>
      tpu.vector_store %arg10[%c0_9, %c0_10], %16 {strides = array<i32>} : memref<128x128xf32, #tpu.memory_space<vmem>>, vector<128x128xf32>,
    } else {
    }
    %c0_i32_2 = arith.constant 0 : i32
    %8 = arith.cmpi eq, %arg1, %c0_i32_2 : i32
    %9 = arith.extui %8 : i1 to i32
    %c0_i32_3 = arith.constant 0 : i32
    %10 = arith.cmpi ne, %9, %c0_i32_3 : i32
    scf.if %10 {
      %c0 = arith.constant 0 : index
      %c0_4 = arith.constant 0 : index
      %11 = vector.load %arg10[%c0, %c0_4] : memref<128x128xf32, #tpu.memory_space<vmem>>, vector<128x128xf32>
      %c0_5 = arith.constant 0 : index
      %c0_6 = arith.constant 0 : index
      %12 = vector.load %arg8[%c0_5, %c0_6] : memref<128x1xf32, #tpu.memory_space<vmem>>, vector<128x1xf32>
      %13 = vector.broadcast %12 : vector<128x1xf32> to vector<128x128xf32>
      %14 = arith.mulf %11, %13 : vector<128x128xf32>
      %c0_7 = arith.constant 0 : index
      %c0_8 = arith.constant 0 : index
      %15 = vector.load %arg6[%c0_7, %c0_8] : memref<128x128xf32, #tpu.memory_space<vmem>>, vector<128x128xf32>
      %cst = arith.constant dense<0.000000e+00> : vector<128x128xf32>
      %16 = tpu.matmul %14, %15, %cst {dimension_numbers = #tpu.dot_dimension_numbers<[1], [0], [0], [1], [0, 0, 1, 1], [], []>} : vector<128x128xf32>, vector<128x128xf32>, vector<128x128xf32> -> vector<128x128xf32>
      %c0_9 = arith.constant 0 : index
      %c0_10 = arith.constant 0 : index
      %17 = vector.load %arg7[%c0_9, %c0_10] : memref<1x128xf32, #tpu.memory_space<vmem>>, vector<1x128xf32>
      %18 = vector.broadcast %17 : vector<1x128xf32> to vector<128x128xf32>
      %19 = arith.addf %16, %18 : vector<128x128xf32>
      %cst_11 = arith.constant 0.000000e+00 : f32
      %20 = vector.broadcast %cst_11 : f32 to vector<128x128xf32>
      %21 = arith.maximumf %19, %20 : vector<128x128xf32>
      %c0_12 = arith.constant 0 : index
      %c0_13 = arith.constant 0 : index
      %22 = vector.load %arg9[%c0_12, %c0_13] : memref<128x128xf32, #tpu.memory_space<vmem>>, vector<128x128xf32>
      tpu.vector_store %arg9[%c0_12, %c0_13], %21 {strides = array<i32>} : memref<128x128xf32, #tpu.memory_space<vmem>>, vector<128x128xf32>,
    } else {
    }
    return
  }
  func.func @transform_0(%arg0: i32, %arg1: i32, %arg2: memref<1x1xi32, #tpu.memory_space<smem>>, %arg3: memref<1xi32, #tpu.memory_space<smem>>) -> (i32, i32) {
    %0 = arith.index_cast %arg0 : i32 to index
    %1 = arith.index_cast %arg1 : i32 to index
    %2 = memref.load %arg2[%0, %1] : memref<1x1xi32, #tpu.memory_space<smem>>
    %c0_i32 = arith.constant 0 : i32
    return %arg0, %2 : i32, i32
  }
  func.func @transform_1(%arg0: i32, %arg1: i32, %arg2: memref<1x1xi32, #tpu.memory_space<smem>>, %arg3: memref<1xi32, #tpu.memory_space<smem>>) -> (i32, i32) {
    %0 = arith.index_cast %arg0 : i32 to index
    %1 = arith.index_cast %arg1 : i32 to index
    %2 = memref.load %arg2[%0, %1] : memref<1x1xi32, #tpu.memory_space<smem>>
    %c0_i32 = arith.constant 0 : i32
    %c0_i32_0 = arith.constant 0 : i32
    return %2, %c0_i32 : i32, i32
  }
  func.func @transform_2(%arg0: i32, %arg1: i32, %arg2: memref<1x1xi32, #tpu.memory_space<smem>>, %arg3: memref<1xi32, #tpu.memory_space<smem>>) -> (i32, i32) {
    %c0_i32 = arith.constant 0 : i32
    %c0_i32_0 = arith.constant 0 : i32
    %c0_i32_1 = arith.constant 0 : i32
    return %c0_i32, %c0_i32_0 : i32, i32
  }
  func.func @transform_3(%arg0: i32, %arg1: i32, %arg2: memref<1x1xi32, #tpu.memory_space<smem>>, %arg3: memref<1xi32, #tpu.memory_space<smem>>) -> (i32, i32) {
    %c0_i32 = arith.constant 0 : i32
    %c0_i32_0 = arith.constant 0 : i32
    %c0_i32_1 = arith.constant 0 : i32
    return %c0_i32, %c0_i32_0 : i32, i32
  }
  func.func @transform_4(%arg0: i32, %arg1: i32, %arg2: memref<1x1xi32, #tpu.memory_space<smem>>, %arg3: memref<1xi32, #tpu.memory_space<smem>>) -> (i32, i32) {
    %c0_i32 = arith.constant 0 : i32
    %c0_i32_0 = arith.constant 0 : i32
    return %arg0, %c0_i32 : i32, i32
  }
  func.func @transform_5(%arg0: i32, %arg1: i32, %arg2: memref<1x1xi32, #tpu.memory_space<smem>>, %arg3: memref<1xi32, #tpu.memory_space<smem>>) -> (i32, i32) {
    %c0_i32 = arith.constant 0 : i32
    %c0_i32_0 = arith.constant 0 : i32
    return %arg0, %c0_i32 : i32, i32
  }
}

</mosaic_0001>

<bundles_post_ra>
// kernel: tpu_custom_call.1
= control target key start
LH: loop header
LB: loop body
LE: loop exit
PB: predicated region body
PF: predicated region fallthrough
CT: control target
= control target key end

     0   :  { %14 = vsyncpa [#allocation7], 0  ;;  %s974_s0 = inlined_call_operand.<no memory space> [shape: s32[1,1], index: 0, kind: input, shape index: {}]   ;;  %s975_s1 = inlined_call_operand.<no memory space> [shape: s32[1], index: 1, kind: input, shape index: {}]   ;;  %s976_s2 = inlined_call_operand.hbm [shape: s8[128,128], index: 2, kind: input, shape index: {}]   ;;  %s977_s3 = inlined_call_operand.hbm [shape: bf16[128,128], index: 3, kind: input, shape index: {}]   ;;  %s978_s4 = inlined_call_operand.vmem [shape: f32[128,128], index: 4, kind: input, shape index: {}]   ;;  %s979_s5 = inlined_call_operand.vmem [shape: f32[1,128], index: 5, kind: input, shape index: {}]   ;;  %s980_s6 = inlined_call_operand.vmem [shape: f32[128,1], index: 6, kind: input, shape index: {}]   ;;  %s981_s7 = inlined_call_operand.hbm [shape: f32[128,128], index: 7, kind: output, shape index: {}]  }
   0x1   :  { %15 = vsyncpa [#allocation10], 0 }
   0x2   :  { %16 = vsyncpa [#allocation8], 0  ;;  %s581_s26 = sshll.u32 %s974_s0, 3  ;;  %s790_s30 = smov [#allocation6]  }
   0x3   :  { %s26_s29 = scalar_lea.hbm %s976_s2, %s581_s26  ;;  %s29_s8 = sshll.u32 %s790_s30, 4  ;;  %s30_s8 = int_to_ptr.vmem [resolvable:$true] %s29_s8 }
   0x4   :  { %s27_s9 = sshll.u32 %s26_s29, 4  ;;  %s618_s12 = sshll.u32 %s974_s0, 6  ;;  %s28_s9 = int_to_ptr.hbm [resolvable:$true] %s27_s9 }
   0x5   :  { %s712_s13 = sshra.s32 %s28_s9, 4  ;;  %s716_s17 = scalar_lea.hbm %s976_s2, 32  ;;  %s713_s13 = int_to_ptr.hbm [resolvable:$true] %s712_s13 }
   0x6   :  { %s714_s14 = scalar_lea.hbm %s713_s13, 32  ;;  %p717_p1 = scmp.lt.s32.totalorder %s713_s13, %s976_s2 }
   0x7   :  { %p715_p0 = scmp.ne.s32.totalorder %s713_s13, %s714_s14  ;;  %p718_p2 = scmp.lt.s32.totalorder %s716_s17, %s714_s14 }
   0x9   :  { %p719_p3 = por %p718_p2, %p717_p1 }
   0xb   :  { %p720_p4 = pnand %p719_p3, %p715_p0 }
   0xd   :  { %723 = shalt.err (!%p720_p4)
}
   0xe   :  { %s791_s20 = smov 128   ;;  %s792_s21 = smov 8  }
   0xf   :  { %35 = dma.hbm_to_vmem [thread:$0]  %s28_s9, 512, %s30_s8, [#allocation7], %s791_s20, %s791_s20, %s792_s21  }
  0x10   :  { %s46_s23 = scalar_lea.hbm %s977_s3, %s618_s12  ;;  %s793_s25 = smov [#allocation9]  }
  0x11   :  { %s47_s24 = sshll.u32 %s46_s23, 4  ;;  %s49_s26 = sshll.u32 %s793_s25, 4  ;;  %s48_s24 = int_to_ptr.hbm [resolvable:$true] %s47_s24  ;;  %s50_s26 = int_to_ptr.vmem [resolvable:$true] %s49_s26 }
  0x12   :  { %s736_s2 = sshra.s32 %s48_s24, 4  ;;  %s740_s30 = scalar_lea.hbm %s977_s3, 64  ;;  %s737_s2 = int_to_ptr.hbm [resolvable:$true] %s736_s2 }
  0x13   :  { %s738_s27 = scalar_lea.hbm %s737_s2, 64  ;;  %p741_p6 = scmp.lt.s32.totalorder %s737_s2, %s977_s3 }
  0x14   :  { %p739_p5 = scmp.ne.s32.totalorder %s737_s2, %s738_s27  ;;  %p742_p7 = scmp.lt.s32.totalorder %s740_s30, %s738_s27 }
  0x16   :  { %p743_p8 = por %p742_p7, %p741_p6 }
  0x18   :  { %p744_p9 = pnand %p743_p8, %p739_p5 }
  0x1a   :  { %747 = shalt.err (!%p744_p9)
}
  0x1b   :  { %s794_s8 = smov 64   ;;  %s795_s9 = smov 4  }
  0x1c   :  { %55 = dma.hbm_to_vmem [thread:$0]  %s48_s24, 1024, %s50_s26, [#allocation10], %s794_s8, %s794_s8, %s795_s9  }
  0x1d   :  { %784 = dma.done.wait [#allocation7], 512  }
  0x1e   :  { %785 = vsyncadd [#allocation7], 4294966784 }
  0x1f   :  { %786 = dma.done.wait [#allocation10], 1024  }
  0x20   :  { %787 = vsyncadd [#allocation10], 4294966272  ;;  %v796_v0 = vmov 0.0   ;;  %p585_p10 = scmp.le.s32.totalorder %s975_s1, 0 }
  0x21   :  { %83 = vst [vmem:[#allocation2 + $0x30] sm:$0xff] %v796_v0 }
  0x22   :  { %84 = vst [vmem:[#allocation2] sm:$0xff] %v796_v0 }
  0x23   :  { %85 = vst [vmem:[#allocation2 + $0x58] sm:$0xff] %v796_v0 }
  0x24   :  { %86 = vst [vmem:[#allocation2 + $0x18] sm:$0xff] %v796_v0 }
  0x25   :  { %87 = vst [vmem:[#allocation2 + $0x50] sm:$0xff] %v796_v0 }
  0x26   :  { %88 = vst [vmem:[#allocation2 + $0x68] sm:$0xff] %v796_v0 }
  0x27   :  { %89 = vst [vmem:[#allocation2 + $0x8] sm:$0xff] %v796_v0 }
  0x28   :  { %90 = vst [vmem:[#allocation2 + $0x48] sm:$0xff] %v796_v0 }
  0x29   :  { %91 = vst [vmem:[#allocation2 + $0x40] sm:$0xff] %v796_v0 }
  0x2a   :  { %92 = vst [vmem:[#allocation2 + $0x20] sm:$0xff] %v796_v0 }
  0x2b   :  { %93 = vst [vmem:[#allocation2 + $0x10] sm:$0xff] %v796_v0 }
  0x2c   :  { %94 = vst [vmem:[#allocation2 + $0x38] sm:$0xff] %v796_v0  ;;  %103 = sbr.rel (%p585_p10) target bundleno = 242 (0xf2), region = 37 }
  0x2d   :  { %95 = vst [vmem:[#allocation2 + $0x60] sm:$0xff] %v796_v0 }
  0x2e   :  { %96 = vst [vmem:[#allocation2 + $0x70] sm:$0xff] %v796_v0 }
  0x2f   :  { %97 = vst [vmem:[#allocation2 + $0x78] sm:$0xff] %v796_v0 }
  0x30   :  { %98 = vst [vmem:[#allocation2 + $0x28] sm:$0xff] %v796_v0 }
  0x31   :  { %v626_v1 = vld [vmem:[#allocation9 + $0x38] sm:$0xff]  ;;  %v625_v2 = vld [vmem:[#allocation9 + $0x30] sm:$0xff]  ;;  %v624_v3 = vld [vmem:[#allocation9 + $0x28] sm:$0xff] }
  0x32   :  { %228 = vmatpush.bf16.msra.mxu0 %v626_v1  ;;  %627 = vmatpush.bf16.msra.mxu1 %v626_v1  ;;  %v623_v4 = vld [vmem:[#allocation9 + $0x20] sm:$0xff]  ;;  %v622_v5 = vld [vmem:[#allocation9 + $0x18] sm:$0xff]  ;;  %v621_v6 = vld [vmem:[#allocation9 + $0x10] sm:$0xff] }
  0x33   :  { %628 = vmatpush.bf16.msra.mxu2 %v626_v1  ;;  %629 = vmatpush.bf16.msra.mxu3 %v626_v1  ;;  %v104_v7 = vld [vmem:[#allocation6] sm:$0xff]  ;;  %v105_v8 = vld [vmem:[#allocation6 + $0x8] sm:$0xff]  ;;  %v106_v9 = vld [vmem:[#allocation6 + $0x10] sm:$0xff] }
  0x34   :  { %v107_v10 = vld [vmem:[#allocation6 + $0x18] sm:$0xff]  ;;  %v108_v11 = vunpack.c.0.s8 %v104_v7  ;;  %v109_v12 = vunpack.c.1.s8 %v104_v7  ;;  %v112_v13 = vunpack.c.0.s8 %v105_v8  ;;  %v113_v14 = vunpack.c.1.s8 %v105_v8  ;;  %v620_v15 = vld [vmem:[#allocation9 + $0x8] sm:$0xff]  ;;  %v619_v24 = vld [vmem:[#allocation9] sm:$0xff] }
  0x35   :  { %v116_v16 = vunpack.c.0.s8 %v106_v9  ;;  %v117_v17 = vunpack.c.1.s8 %v106_v9  ;;  %v120_v18 = vunpack.c.0.s8 %v107_v10  ;;  %v121_v19 = vunpack.c.1.s8 %v107_v10  ;;  %v148_v53 = vld [vmem:[#allocation2 + $0x30] sm:$0xff]  ;;  %v156_v59 = vld [vmem:[#allocation2 + $0x40] sm:$0xff]  ;;  %v153_v62 = vld [vmem:[#allocation2 + $0x68] sm:$0xff] }
  0x36   :  { %229 = vmatpush.bf16.msra.mxu0 %v625_v2  ;;  %630 = vmatpush.bf16.msra.mxu1 %v625_v2  ;;  %v124_v20 = vcvt.s32.f32 %v108_v11  ;;  %v125_v21 = vcvt.s32.f32 %v109_v12  ;;  %v128_v22 = vcvt.s32.f32 %v112_v13  ;;  %v129_v23 = vcvt.s32.f32 %v113_v14  ;;  %v152_v54 = vld [vmem:[#allocation2 + $0x50] sm:$0xff]  ;;  %v160_v60 = vld [vmem:[#allocation2 + $0x60] sm:$0xff] }
  0x37   :  { %631 = vmatpush.bf16.msra.mxu2 %v625_v2  ;;  %632 = vmatpush.bf16.msra.mxu3 %v625_v2  ;;  %v132_v25 = vcvt.s32.f32 %v116_v16  ;;  %v133_v26 = vcvt.s32.f32 %v117_v17  ;;  %v136_v27 = vcvt.s32.f32 %v120_v18  ;;  %v137_v28 = vcvt.s32.f32 %v121_v19  ;;  %v149_v61 = vld [vmem:[#allocation2] sm:$0xff]  ;;  %v158_v19 = vld [vmem:[#allocation2 + $0x10] sm:$0xff] }
  0x38   :  { %v140_v29 = vpack.c.bf16 %v125_v21, %v124_v20  ;;  %v142_v30 = vpack.c.bf16 %v129_v23, %v128_v22  ;;  %v110_v33 = vunpack.c.2.s8 %v104_v7  ;;  %v111_v34 = vunpack.c.3.s8 %v104_v7  ;;  %v157_v7 = vld [vmem:[#allocation2 + $0x20] sm:$0xff]  ;;  %v162_v20 = vld [vmem:[#allocation2 + $0x78] sm:$0xff]  ;;  %v155_v22 = vld [vmem:[#allocation2 + $0x48] sm:$0xff] }
  0x39   :  { %v144_v31 = vpack.c.bf16 %v133_v26, %v132_v25  ;;  %v146_v32 = vpack.c.bf16 %v137_v28, %v136_v27  ;;  %v114_v35 = vunpack.c.2.s8 %v105_v8  ;;  %v115_v36 = vunpack.c.3.s8 %v105_v8  ;;  %v161_v8 = vld [vmem:[#allocation2 + $0x70] sm:$0xff]  ;;  %v151_v21 = vld [vmem:[#allocation2 + $0x18] sm:$0xff] }
  0x3a   :  { %230 = vmatpush.bf16.msra.mxu0 %v624_v3  ;;  %633 = vmatpush.bf16.msra.mxu1 %v624_v3  ;;  %v118_v37 = vunpack.c.2.s8 %v106_v9  ;;  %v119_v38 = vunpack.c.3.s8 %v106_v9  ;;  %v122_v39 = vunpack.c.2.s8 %v107_v10  ;;  %v123_v40 = vunpack.c.3.s8 %v107_v10  ;;  %v150_v9 = vld [vmem:[#allocation2 + $0x58] sm:$0xff]  ;;  %v154_v10 = vld [vmem:[#allocation2 + $0x8] sm:$0xff] }
  0x3b   :  { %634 = vmatpush.bf16.msra.mxu2 %v624_v3  ;;  %635 = vmatpush.bf16.msra.mxu3 %v624_v3  ;;  %v126_v41 = vcvt.s32.f32 %v110_v33  ;;  %v127_v42 = vcvt.s32.f32 %v111_v34  ;;  %v130_v43 = vcvt.s32.f32 %v114_v35  ;;  %v131_v44 = vcvt.s32.f32 %v115_v36 }
  0x3c   :  { %v134_v45 = vcvt.s32.f32 %v118_v37  ;;  %v135_v46 = vcvt.s32.f32 %v119_v38  ;;  %v138_v47 = vcvt.s32.f32 %v122_v39  ;;  %v139_v48 = vcvt.s32.f32 %v123_v40 }
  0x3d   :  { %v141_v49 = vpack.c.bf16 %v127_v42, %v126_v41  ;;  %v143_v50 = vpack.c.bf16 %v131_v44, %v130_v43 }
  0x3e   :  { %231 = vmatpush.bf16.msra.mxu0 %v623_v4  ;;  %636 = vmatpush.bf16.msra.mxu1 %v623_v4  ;;  %v145_v51 = vpack.c.bf16 %v135_v46, %v134_v45  ;;  %v147_v52 = vpack.c.bf16 %v139_v48, %v138_v47 }
  0x3f   :  { %637 = vmatpush.bf16.msra.mxu2 %v623_v4  ;;  %638 = vmatpush.bf16.msra.mxu3 %v623_v4 }
  0x42   :  { %232 = vmatpush.bf16.msra.mxu0 %v622_v5  ;;  %639 = vmatpush.bf16.msra.mxu1 %v622_v5 }
  0x43   :  { %640 = vmatpush.bf16.msra.mxu2 %v622_v5  ;;  %641 = vmatpush.bf16.msra.mxu3 %v622_v5 }
  0x46   :  { %233 = vmatpush.bf16.msra.mxu0 %v621_v6  ;;  %642 = vmatpush.bf16.msra.mxu1 %v621_v6 }
  0x47   :  { %643 = vmatpush.bf16.msra.mxu2 %v621_v6  ;;  %644 = vmatpush.bf16.msra.mxu3 %v621_v6 }
  0x4a   :  { %234 = vmatpush.bf16.msra.mxu0 %v620_v15  ;;  %645 = vmatpush.bf16.msra.mxu1 %v620_v15 }
  0x4b   :  { %646 = vmatpush.bf16.msra.mxu2 %v620_v15  ;;  %647 = vmatpush.bf16.msra.mxu3 %v620_v15 }
  0x4e   :  { %235 = vmatpush.bf16.msra.mxu0 %v619_v24  ;;  %648 = vmatpush.bf16.msra.mxu1 %v619_v24 }
  0x4f   :  { %649 = vmatpush.bf16.msra.mxu2 %v619_v24  ;;  %650 = vmatpush.bf16.msra.mxu3 %v619_v24 }
  0x51   :  { %236 = vmatmul.bf16.vlgmr.msra.gmra.mxu0 %v140_v29  ;;  %246 = vmatmul.bf16.vlgmr.msra.gmra.mxu1 %v142_v30 }
  0x52   :  { %256 = vmatmul.bf16.vlgmr.msra.gmra.mxu2 %v144_v31  ;;  %266 = vmatmul.bf16.vlgmr.msra.gmra.mxu3 %v146_v32  ;;  %v159_v31 = vld [vmem:[#allocation2 + $0x38] sm:$0xff]  ;;  %v163_v32 = vld [vmem:[#allocation2 + $0x28] sm:$0xff] }
  0x61   :  { %241 = vmatmul.bf16.gmra.mxu0 %v141_v49  ;;  %251 = vmatmul.bf16.gmra.mxu1 %v143_v50 }
  0x62   :  { %261 = vmatmul.bf16.gmra.mxu2 %v145_v51  ;;  %271 = vmatmul.bf16.gmra.mxu3 %v147_v52 }
  0xce   :  { %v237_v55 = vpop.f32.mrf.mxu0  ;;  %v247_v56 = vpop.f32.mrf.mxu1 }
  0xcf   :  { %v277_v57 = vadd.f32 %v237_v55, %v148_v53  ;;  %v281_v58 = vadd.f32 %v247_v56, %v152_v54 }
  0xd1   :  { %293 = vst [vmem:[#allocation2 + $0x30] sm:$0xff] %v277_v57 }
  0xd2   :  { %297 = vst [vmem:[#allocation2 + $0x50] sm:$0xff] %v281_v58 }
  0xd5   :  { %v257_v63 = vpop.f32.mrf.mxu2  ;;  %v267_v0 = vpop.f32.mrf.mxu3 }
  0xd6   :  { %v285_v1 = vadd.f32 %v257_v63, %v156_v59  ;;  %v289_v2 = vadd.f32 %v267_v0, %v160_v60  ;;  %v239_v3 = vpop.f32.mrf.mxu0  ;;  %v249_v4 = vpop.f32.mrf.mxu1 }
  0xd7   :  { %v278_v5 = vadd.f32 %v239_v3, %v149_v61  ;;  %v282_v6 = vadd.f32 %v249_v4, %v153_v62 }
  0xd8   :  { %301 = vst [vmem:[#allocation2 + $0x40] sm:$0xff] %v285_v1 }
  0xd9   :  { %305 = vst [vmem:[#allocation2 + $0x60] sm:$0xff] %v289_v2 }
  0xda   :  { %294 = vst [vmem:[#allocation2] sm:$0xff] %v278_v5 }
  0xdb   :  { %298 = vst [vmem:[#allocation2 + $0x68] sm:$0xff] %v282_v6 }
  0xdd   :  { %v259_v11 = vpop.f32.mrf.mxu2  ;;  %v269_v12 = vpop.f32.mrf.mxu3 }
  0xde   :  { %v286_v13 = vadd.f32 %v259_v11, %v157_v7  ;;  %v290_v14 = vadd.f32 %v269_v12, %v161_v8  ;;  %v242_v15 = vpop.f32.mrf.mxu0  ;;  %v252_v16 = vpop.f32.mrf.mxu1 }
  0xdf   :  { %v279_v17 = vadd.f32 %v242_v15, %v150_v9  ;;  %v283_v18 = vadd.f32 %v252_v16, %v154_v10 }
  0xe0   :  { %302 = vst [vmem:[#allocation2 + $0x20] sm:$0xff] %v286_v13 }
  0xe1   :  { %306 = vst [vmem:[#allocation2 + $0x70] sm:$0xff] %v290_v14 }
  0xe2   :  { %295 = vst [vmem:[#allocation2 + $0x58] sm:$0xff] %v279_v17 }
  0xe3   :  { %299 = vst [vmem:[#allocation2 + $0x8] sm:$0xff] %v283_v18 }
  0xe5   :  { %v262_v23 = vpop.f32.mrf.mxu2  ;;  %v272_v24 = vpop.f32.mrf.mxu3 }
  0xe6   :  { %v287_v25 = vadd.f32 %v262_v23, %v158_v19  ;;  %v291_v26 = vadd.f32 %v272_v24, %v162_v20  ;;  %v244_v27 = vpop.f32.mrf.mxu0  ;;  %v254_v28 = vpop.f32.mrf.mxu1 }
  0xe7   :  { %v280_v29 = vadd.f32 %v244_v27, %v151_v21  ;;  %v284_v30 = vadd.f32 %v254_v28, %v155_v22 }
  0xe8   :  { %303 = vst [vmem:[#allocation2 + $0x10] sm:$0xff] %v287_v25 }
  0xe9   :  { %307 = vst [vmem:[#allocation2 + $0x78] sm:$0xff] %v291_v26 }
  0xea   :  { %296 = vst [vmem:[#allocation2 + $0x18] sm:$0xff] %v280_v29 }
  0xeb   :  { %300 = vst [vmem:[#allocation2 + $0x48] sm:$0xff] %v284_v30 }
  0xed   :  { %v264_v33 = vpop.f32.mrf.mxu2  ;;  %v274_v34 = vpop.f32.mrf.mxu3 }
  0xee   :  { %v288_v35 = vadd.f32 %v264_v33, %v159_v31  ;;  %v292_v36 = vadd.f32 %v274_v34, %v163_v32 }
  0xf0   :  { %304 = vst [vmem:[#allocation2 + $0x38] sm:$0xff] %v288_v35 }
  0xf1   :  { %308 = vst [vmem:[#allocation2 + $0x28] sm:$0xff] %v292_v36 }
  0xf2 PF:  { %v337_v37 = vld [vmem:[%s980_s6 + $0x48] sm:$0xff]  ;;  %v336_v38 = vld [vmem:[%s980_s6 + $0x40] sm:$0xff]  ;;  %v797_v40 = vmov 0   ;;  %v455_v44 = vld [vmem:[%s978_s4 + $0x78] sm:$0xff]  ;;  %s563_s29 = sshll.u32 %s981_s7, 4  ;;  %s564_s29 = int_to_ptr.hbm [resolvable:$true] %s563_s29 }
  0xf3   :  { %v328_v39 = vld [vmem:[%s980_s6] sm:$0xff]  ;;  %710 = vset.pattern.permute.xlu2 %v797_v40  ;;  %709 = vset.pattern.permute.xlu1 %v797_v40  ;;  %v341_v41 = vld [vmem:[%s980_s6 + $0x68] sm:$0xff]  ;;  %v454_v45 = vld [vmem:[%s978_s4 + $0x70] sm:$0xff] }
  0xf4   :  { %708 = vset.pattern.permute.xlu0 %v797_v40  ;;  %391 = vperm.xlu2 %710, %v337_v37   ;;  %v340_v42 = vld [vmem:[%s980_s6 + $0x60] sm:$0xff]  ;;  %v453_v46 = vld [vmem:[%s978_s4 + $0x68] sm:$0xff]  ;;  %v338_v47 = vld [vmem:[%s980_s6 + $0x50] sm:$0xff] }
  0xf5   :  { %386 = vperm.xlu0 %708, %v336_v38   ;;  %346 = vperm.xlu1 %709, %v328_v39   ;;  %v332_v43 = vld [vmem:[%s980_s6 + $0x20] sm:$0xff]  ;;  %v329_v48 = vld [vmem:[%s980_s6 + $0x8] sm:$0xff]  ;;  %v334_v50 = vld [vmem:[%s980_s6 + $0x30] sm:$0xff] }
  0xf6   :  { %652 = vmatpush.msra.mxu2 %v455_v44  ;;  %460 = vmatpush.msra.mxu0 %v455_v44  ;;  %v333_v49 = vld [vmem:[%s980_s6 + $0x28] sm:$0xff]  ;;  %v342_v51 = vld [vmem:[%s980_s6 + $0x70] sm:$0xff]  ;;  %v331_v53 = vld [vmem:[%s980_s6 + $0x18] sm:$0xff] }
  0xf7   :  { %651 = vmatpush.msra.mxu1 %v455_v44  ;;  %653 = vmatpush.msra.mxu3 %v455_v44  ;;  %v330_v52 = vld [vmem:[%s980_s6 + $0x10] sm:$0xff]  ;;  %v339_v54 = vld [vmem:[%s980_s6 + $0x58] sm:$0xff]  ;;  %v452_v57 = vld [vmem:[%s978_s4 + $0x60] sm:$0xff] }
  0xf8   :  { %655 = vmatpush.msra.mxu2 %v454_v45  ;;  %461 = vmatpush.msra.mxu0 %v454_v45  ;;  %v343_v55 = vld [vmem:[%s980_s6 + $0x78] sm:$0xff]  ;;  %v450_v59 = vld [vmem:[%s978_s4 + $0x50] sm:$0xff]  ;;  %v449_v60 = vld [vmem:[%s978_s4 + $0x48] sm:$0xff] }
  0xf9   :  { %654 = vmatpush.msra.mxu1 %v454_v45  ;;  %656 = vmatpush.msra.mxu3 %v454_v45  ;;  %v335_v56 = vld [vmem:[%s980_s6 + $0x38] sm:$0xff]  ;;  %v448_v61 = vld [vmem:[%s978_s4 + $0x40] sm:$0xff]  ;;  %v446_v63 = vld [vmem:[%s978_s4 + $0x30] sm:$0xff] }
  0xfa   :  { %658 = vmatpush.msra.mxu2 %v453_v46  ;;  %462 = vmatpush.msra.mxu0 %v453_v46  ;;  %v451_v58 = vld [vmem:[%s978_s4 + $0x58] sm:$0xff]  ;;  %v445_v0 = vld [vmem:[%s978_s4 + $0x28] sm:$0xff]  ;;  %v444_v1 = vld [vmem:[%s978_s4 + $0x20] sm:$0xff] }
  0xfb   :  { %657 = vmatpush.msra.mxu1 %v453_v46  ;;  %659 = vmatpush.msra.mxu3 %v453_v46  ;;  %v447_v62 = vld [vmem:[%s978_s4 + $0x38] sm:$0xff]  ;;  %v442_v3 = vld [vmem:[%s978_s4 + $0x10] sm:$0xff]  ;;  %v441_v4 = vld [vmem:[%s978_s4 + $0x8] sm:$0xff] }
  0xfc   :  { %411 = vperm.xlu2 %710, %v341_v41   ;;  %661 = vmatpush.msra.mxu2 %v452_v57  ;;  %v443_v2 = vld [vmem:[%s978_s4 + $0x18] sm:$0xff]  ;;  %v440_v5 = vld [vmem:[%s978_s4] sm:$0xff]  ;;  %v312_v8 = vld [vmem:[#allocation2 + $0x30] sm:$0xff] }
  0xfd   :  { %406 = vperm.xlu0 %708, %v340_v42   ;;  %366 = vperm.xlu1 %709, %v332_v43   ;;  %v320_v7 = vld [vmem:[#allocation2 + $0x40] sm:$0xff]  ;;  %v316_v16 = vld [vmem:[#allocation2 + $0x50] sm:$0xff]  ;;  %v317_v24 = vld [vmem:[#allocation2 + $0x68] sm:$0xff] }
  0xfe   :  { %463 = vmatpush.msra.mxu0 %v452_v57  ;;  %660 = vmatpush.msra.mxu1 %v452_v57  ;;  %v321_v14 = vld [vmem:[#allocation2 + $0x20] sm:$0xff]  ;;  %v325_v25 = vld [vmem:[#allocation2 + $0x70] sm:$0xff]  ;;  %v318_v34 = vld [vmem:[#allocation2 + $0x8] sm:$0xff] }
  0xff   :  { %662 = vmatpush.msra.mxu3 %v452_v57  ;;  %664 = vmatpush.msra.mxu2 %v451_v58  ;;  %v324_v15 = vld [vmem:[#allocation2 + $0x60] sm:$0xff]  ;;  %v322_v26 = vld [vmem:[#allocation2 + $0x10] sm:$0xff]  ;;  %v326_v35 = vld [vmem:[#allocation2 + $0x78] sm:$0xff] }
 0x100   :  { %464 = vmatpush.msra.mxu0 %v451_v58  ;;  %663 = vmatpush.msra.mxu1 %v451_v58  ;;  %v313_v23 = vld [vmem:[#allocation2] sm:$0xff]  ;;  %v314_v36 = vld [vmem:[#allocation2 + $0x58] sm:$0xff]  ;;  %v327_v45 = vld [vmem:[#allocation2 + $0x28] sm:$0xff] }
 0x101   :  { %665 = vmatpush.msra.mxu3 %v451_v58  ;;  %667 = vmatpush.msra.mxu2 %v450_v59  ;;  %v315_v43 = vld [vmem:[#allocation2 + $0x18] sm:$0xff] }
 0x102   :  { %465 = vmatpush.msra.mxu0 %v450_v59  ;;  %666 = vmatpush.msra.mxu1 %v450_v59  ;;  %v323_v44 = vld [vmem:[#allocation2 + $0x38] sm:$0xff] }
 0x103   :  { %668 = vmatpush.msra.mxu3 %v450_v59  ;;  %670 = vmatpush.msra.mxu2 %v449_v60 }
 0x104   :  { %396 = vperm.xlu2 %710, %v338_v47   ;;  %466 = vmatpush.msra.mxu0 %v449_v60 }
 0x105   :  { %351 = vperm.xlu0 %708, %v329_v48   ;;  %371 = vperm.xlu1 %709, %v333_v49  }
 0x106   :  { %669 = vmatpush.msra.mxu1 %v449_v60  ;;  %671 = vmatpush.msra.mxu3 %v449_v60 }
 0x107   :  { %673 = vmatpush.msra.mxu2 %v448_v61  ;;  %467 = vmatpush.msra.mxu0 %v448_v61 }
 0x108   :  { %672 = vmatpush.msra.mxu1 %v448_v61  ;;  %674 = vmatpush.msra.mxu3 %v448_v61 }
 0x109   :  { %676 = vmatpush.msra.mxu2 %v447_v62  ;;  %468 = vmatpush.msra.mxu0 %v447_v62 }
 0x10a   :  { %675 = vmatpush.msra.mxu1 %v447_v62  ;;  %677 = vmatpush.msra.mxu3 %v447_v62 }
 0x10b   :  { %679 = vmatpush.msra.mxu2 %v446_v63  ;;  %469 = vmatpush.msra.mxu0 %v446_v63 }
 0x10c   :  { %376 = vperm.xlu2 %710, %v334_v50   ;;  %678 = vmatpush.msra.mxu1 %v446_v63 }
 0x10d   :  { %416 = vperm.xlu0 %708, %v342_v51   ;;  %356 = vperm.xlu1 %709, %v330_v52   ;;  %v319_v51 = vld [vmem:[#allocation2 + $0x48] sm:$0xff] }
 0x10e   :  { %680 = vmatpush.msra.mxu3 %v446_v63  ;;  %682 = vmatpush.msra.mxu2 %v445_v0 }
 0x10f   :  { %470 = vmatpush.msra.mxu0 %v445_v0  ;;  %681 = vmatpush.msra.mxu1 %v445_v0 }
 0x110   :  { %683 = vmatpush.msra.mxu3 %v445_v0  ;;  %685 = vmatpush.msra.mxu2 %v444_v1 }
 0x111   :  { %471 = vmatpush.msra.mxu0 %v444_v1  ;;  %684 = vmatpush.msra.mxu1 %v444_v1 }
 0x112   :  { %686 = vmatpush.msra.mxu3 %v444_v1  ;;  %688 = vmatpush.msra.mxu2 %v443_v2 }
 0x113   :  { %472 = vmatpush.msra.mxu0 %v443_v2  ;;  %687 = vmatpush.msra.mxu1 %v443_v2 }
 0x114   :  { %361 = vperm.xlu2 %710, %v331_v53   ;;  %689 = vmatpush.msra.mxu3 %v443_v2 }
 0x115   :  { %401 = vperm.xlu0 %708, %v339_v54   ;;  %421 = vperm.xlu1 %709, %v343_v55   ;;  %v711_v54 = vld [vmem:[%s979_s5] ss:$0 sm:$0xff]  ;;  %s798_s5 = smov [#allocation11]  }
 0x116   :  { %691 = vmatpush.msra.mxu2 %v442_v3  ;;  %473 = vmatpush.msra.mxu0 %v442_v3  ;;  %s561_s2 = sshll.u32 %s798_s5, 4  ;;  %s562_s2 = int_to_ptr.vmem [resolvable:$true] %s561_s2 }
 0x117   :  { %690 = vmatpush.msra.mxu1 %v442_v3  ;;  %692 = vmatpush.msra.mxu3 %v442_v3 }
 0x118   :  { %694 = vmatpush.msra.mxu2 %v441_v4  ;;  %474 = vmatpush.msra.mxu0 %v441_v4 }
 0x119   :  { %693 = vmatpush.msra.mxu1 %v441_v4  ;;  %695 = vmatpush.msra.mxu3 %v441_v4 }
 0x11a   :  { %697 = vmatpush.msra.mxu2 %v440_v5  ;;  %475 = vmatpush.msra.mxu0 %v440_v5 }
 0x11b   :  { %696 = vmatpush.msra.mxu1 %v440_v5  ;;  %698 = vmatpush.msra.mxu3 %v440_v5 }
 0x11d   :  { %381 = vperm.xlu0 %708, %v335_v56  }
 0x14e   :  { %v392_v6 = vpop.permute.xlu2 %391 }
 0x14f   :  { %v433_v17 = vmul.f32 %v392_v6, %v321_v14 }
 0x156   :  { %v412_v9 = vpop.permute.xlu2 %411 }
 0x157   :  { %v437_v31 = vmul.f32 %v412_v9, %v325_v25 }
 0x15e   :  { %v397_v22 = vpop.permute.xlu2 %396 }
 0x15f   :  { %v434_v32 = vmul.f32 %v397_v22, %v322_v26 }
 0x166   :  { %v377_v33 = vpop.permute.xlu2 %376 }
 0x167   :  { %v387_v10 = vpop.permute.xlu0 %386  ;;  %v347_v11 = vpop.permute.xlu1 %346  ;;  %v430_v39 = vmul.f32 %v377_v33, %v318_v34 }
 0x168   :  { %v432_v12 = vmul.f32 %v387_v10, %v320_v7  ;;  %v424_v13 = vmul.f32 %v347_v11, %v312_v8 }
 0x16a   :  { %500 = vmatmul.f32.vlgmr.msra.gmra.mxu2 %v432_v12  ;;  %476 = vmatmul.f32.vlgmr.msra.gmra.mxu0 %v424_v13 }
 0x16e   :  { %v362_v42 = vpop.permute.xlu2 %361 }
 0x16f   :  { %v407_v18 = vpop.permute.xlu0 %406  ;;  %v367_v19 = vpop.permute.xlu1 %366  ;;  %v427_v48 = vmul.f32 %v362_v42, %v315_v43 }
 0x170   :  { %v436_v20 = vmul.f32 %v407_v18, %v324_v15  ;;  %v428_v21 = vmul.f32 %v367_v19, %v316_v16 }
 0x172   :  { %488 = vmatmul.f32.vlgmr.msra.gmra.mxu1 %v428_v21  ;;  %503 = vmatmul.f32.gmra.mxu2 %v433_v17 }
 0x173   :  { %512 = vmatmul.f32.vlgmr.msra.gmra.mxu3 %v436_v20 }
 0x177   :  { %v352_v27 = vpop.permute.xlu0 %351  ;;  %v372_v28 = vpop.permute.xlu1 %371 }
 0x178   :  { %v425_v29 = vmul.f32 %v352_v27, %v313_v23  ;;  %v429_v30 = vmul.f32 %v372_v28, %v317_v24 }
 0x17a   :  { %479 = vmatmul.f32.gmra.mxu0 %v425_v29  ;;  %491 = vmatmul.f32.gmra.mxu1 %v429_v30 }
 0x17b   :  { %506 = vmatmul.f32.gmra.mxu2 %v434_v32  ;;  %515 = vmatmul.f32.gmra.mxu3 %v437_v31 }
 0x17f   :  { %v417_v37 = vpop.permute.xlu0 %416  ;;  %v357_v38 = vpop.permute.xlu1 %356 }
 0x180   :  { %v438_v40 = vmul.f32 %v417_v37, %v326_v35  ;;  %v426_v41 = vmul.f32 %v357_v38, %v314_v36 }
 0x182   :  { %482 = vmatmul.f32.gmra.mxu0 %v426_v41  ;;  %494 = vmatmul.f32.gmra.mxu1 %v430_v39 }
 0x183   :  { %518 = vmatmul.f32.gmra.mxu3 %v438_v40 }
 0x187   :  { %v402_v46 = vpop.permute.xlu0 %401  ;;  %v422_v47 = vpop.permute.xlu1 %421 }
 0x188   :  { %v435_v49 = vmul.f32 %v402_v46, %v323_v44  ;;  %v439_v50 = vmul.f32 %v422_v47, %v327_v45 }
 0x18a   :  { %485 = vmatmul.f32.gmra.mxu0 %v427_v48  ;;  %509 = vmatmul.f32.gmra.mxu2 %v435_v49 }
 0x18b   :  { %521 = vmatmul.f32.gmra.mxu3 %v439_v50 }
 0x18f   :  { %v382_v52 = vpop.permute.xlu0 %381 }
 0x190   :  { %v431_v53 = vmul.f32 %v382_v52, %v319_v51 }
 0x192   :  { %497 = vmatmul.f32.gmra.mxu1 %v431_v53 }
 0x1e7   :  { %v477_v55 = vpop.f32.mrf.mxu0 }
 0x1e8   :  { %v478_v56 = vadd.f32 %v711_v54, %v477_v55 }
 0x1ea   :  { %v525_v57 = vmax.f32 %v478_v56, 0.0 }
 0x1ec   :  { %541 = vst [vmem:[#allocation11] sm:$0xff] %v525_v57 }
 0x1ed   :  { %v501_v58 = vpop.f32.mrf.mxu2 }
 0x1ee   :  { %v502_v59 = vadd.f32 %v711_v54, %v501_v58 }
 0x1ef   :  { %v489_v60 = vpop.f32.mrf.mxu1 }
 0x1f0   :  { %v533_v61 = vmax.f32 %v502_v59, 0.0  ;;  %v490_v62 = vadd.f32 %v711_v54, %v489_v60 }
 0x1f2   :  { %549 = vst [vmem:[#allocation11 + $0x40] sm:$0xff] %v533_v61  ;;  %v529_v63 = vmax.f32 %v490_v62, 0.0 }
 0x1f4   :  { %545 = vst [vmem:[#allocation11 + $0x20] sm:$0xff] %v529_v63 }
 0x1f5   :  { %v504_v0 = vpop.f32.mrf.mxu2 }
 0x1f6   :  { %v505_v1 = vadd.f32 %v711_v54, %v504_v0  ;;  %v513_v2 = vpop.f32.mrf.mxu3 }
 0x1f7   :  { %v514_v3 = vadd.f32 %v711_v54, %v513_v2  ;;  %v480_v4 = vpop.f32.mrf.mxu0  ;;  %v492_v5 = vpop.f32.mrf.mxu1 }
 0x1f8   :  { %v534_v6 = vmax.f32 %v505_v1, 0.0  ;;  %v481_v7 = vadd.f32 %v711_v54, %v480_v4  ;;  %v493_v8 = vadd.f32 %v711_v54, %v492_v5 }
 0x1f9   :  { %v537_v9 = vmax.f32 %v514_v3, 0.0 }
 0x1fa   :  { %550 = vst [vmem:[#allocation11 + $0x48] sm:$0xff] %v534_v6  ;;  %v526_v10 = vmax.f32 %v481_v7, 0.0  ;;  %v530_v11 = vmax.f32 %v493_v8, 0.0 }
 0x1fb   :  { %553 = vst [vmem:[#allocation11 + $0x60] sm:$0xff] %v537_v9 }
 0x1fc   :  { %542 = vst [vmem:[#allocation11 + $0x8] sm:$0xff] %v526_v10 }
 0x1fd   :  { %546 = vst [vmem:[#allocation11 + $0x28] sm:$0xff] %v530_v11 }
 0x1fe   :  { %v507_v12 = vpop.f32.mrf.mxu2  ;;  %v516_v13 = vpop.f32.mrf.mxu3 }
 0x1ff   :  { %v508_v14 = vadd.f32 %v711_v54, %v507_v12  ;;  %v517_v15 = vadd.f32 %v711_v54, %v516_v13  ;;  %v483_v16 = vpop.f32.mrf.mxu0  ;;  %v495_v17 = vpop.f32.mrf.mxu1 }
 0x200   :  { %v484_v18 = vadd.f32 %v711_v54, %v483_v16  ;;  %v496_v19 = vadd.f32 %v711_v54, %v495_v17 }
 0x201   :  { %v535_v20 = vmax.f32 %v508_v14, 0.0  ;;  %v538_v21 = vmax.f32 %v517_v15, 0.0 }
 0x202   :  { %v527_v22 = vmax.f32 %v484_v18, 0.0  ;;  %v531_v23 = vmax.f32 %v496_v19, 0.0 }
 0x203   :  { %551 = vst [vmem:[#allocation11 + $0x50] sm:$0xff] %v535_v20 }
 0x204   :  { %554 = vst [vmem:[#allocation11 + $0x68] sm:$0xff] %v538_v21 }
 0x205   :  { %543 = vst [vmem:[#allocation11 + $0x10] sm:$0xff] %v527_v22 }
 0x206   :  { %547 = vst [vmem:[#allocation11 + $0x30] sm:$0xff] %v531_v23  ;;  %v519_v24 = vpop.f32.mrf.mxu3 }
 0x207   :  { %v520_v25 = vadd.f32 %v711_v54, %v519_v24  ;;  %v486_v26 = vpop.f32.mrf.mxu0 }
 0x208   :  { %v487_v27 = vadd.f32 %v711_v54, %v486_v26 }
 0x209   :  { %v539_v28 = vmax.f32 %v520_v25, 0.0 }
 0x20a   :  { %v528_v29 = vmax.f32 %v487_v27, 0.0 }
 0x20b   :  { %555 = vst [vmem:[#allocation11 + $0x70] sm:$0xff] %v539_v28 }
 0x20c   :  { %544 = vst [vmem:[#allocation11 + $0x18] sm:$0xff] %v528_v29 }
 0x20d   :  { %v510_v30 = vpop.f32.mrf.mxu2 }
 0x20e   :  { %v511_v31 = vadd.f32 %v711_v54, %v510_v30  ;;  %v522_v32 = vpop.f32.mrf.mxu3 }
 0x20f   :  { %v523_v33 = vadd.f32 %v711_v54, %v522_v32  ;;  %v498_v34 = vpop.f32.mrf.mxu1 }
 0x210   :  { %v536_v35 = vmax.f32 %v511_v31, 0.0  ;;  %v499_v36 = vadd.f32 %v711_v54, %v498_v34 }
 0x211   :  { %v540_v37 = vmax.f32 %v523_v33, 0.0 }
 0x212   :  { %552 = vst [vmem:[#allocation11 + $0x58] sm:$0xff] %v536_v35  ;;  %v532_v38 = vmax.f32 %v499_v36, 0.0 }
 0x213   :  { %556 = vst [vmem:[#allocation11 + $0x78] sm:$0xff] %v540_v37 }
 0x214   :  { %548 = vst [vmem:[#allocation11 + $0x38] sm:$0xff] %v532_v38 }
 0x215   :  { %569 = dma.vmem_to_hbm [thread:$0]  %s562_s2, 2048, %s564_s29, [#allocation8], %s791_s20, %s791_s20, %s792_s21  }
 0x216   :  { %788 = dma.done.wait [#allocation8], 2048  }
 0x217   :  { %789 = vsyncadd [#allocation8], 4294965248 }
 0x218   :  { %574 = vsyncpa [#allocation7], 1 }
 0x219   :  { %575 = vsyncpa [#allocation10], 1 }
 0x21a   :  { %576 = vsyncpa [#allocation8], 1 }

</bundles_post_ra>
